<compile_context>
chip_gen: v5e
topology: v5e:2x2
jax: 0.10.0
libtpu: 0.0.40
codegen_flags: <defaults>
</compile_context>

<pallas_src>
import jax
import jax.numpy as jnp
from jax import lax
from jax.experimental import pallas as pl
from jax.experimental.pallas import tpu as pltpu

ALPHA = 0.1
_LANE = 128
_MAX_BLOCK_ROWS = 4096      # (4096, 128) f32 block = 2 MiB
_HALLEY_ITERS = 3


def _leaky_softplus(x, alpha=ALPHA):
    """Reference forward (same stable formula as the PyTorch LeakySoftplus)."""
    sp = jnp.log1p(jnp.exp(-jnp.abs(x))) + jnp.maximum(x, 0.0)
    return alpha * x + (1.0 - alpha) * sp


def _inv_leaky_softplus_kernel(y_ref, o_ref):
    """Elementwise Halley inversion of y = a*x + (1-a)*softplus(x)."""
    y = y_ref[...].astype(jnp.float32)
    # Initial guess from the asymptotes (x ~ y for y>0, x ~ y/alpha for y<=0).
    # Worst-case initial error ~1.63 near y = 0.
    x0 = jnp.where(y > 0.0, y, y * (1.0 / ALPHA))

    one_m_a = 1.0 - ALPHA

    def halley(_, x):
        z = jnp.exp(-jnp.abs(x))                        # EUP exp, z in (0, 1]
        sp = jnp.log(1.0 + z) + jnp.maximum(x, 0.0)     # EUP log + VPU (stable softplus)
        r = ALPHA * x + one_m_a * sp - y                # residual f(x) - y
        t = jnp.where(x >= 0.0, 1.0, z)                 # sigmoid numerator
        zp1 = 1.0 + z
        n = ALPHA * zp1 + one_m_a * t                   # f'(x) * (1+z), >= 0.1
        num = 2.0 * r * n * zp1
        den = 2.0 * (n * n) - one_m_a * r * z           # > 0 for all iterates here
        # Halley step = 2*f*f' / (2*f'^2 - f*f''), single approx rcp (EUP).
        return x - num * pl.reciprocal(den, approx=True)

    x = lax.fori_loop(0, _HALLEY_ITERS, halley, x0, unroll=True)
    o_ref[...] = x.astype(o_ref.dtype)


def _choose_block_rows(rows):
    """Balanced, 8-aligned block rows; >=2 blocks when possible (v7x dual-TC)."""
    if rows <= 8:
        return rows                      # single full block (block == full dim)
    n_blocks = max(2, pl.cdiv(rows, _MAX_BLOCK_ROWS))
    per_block = pl.cdiv(rows, n_blocks)
    return min(rows, ((per_block + 7) // 8) * 8)


def inverted_leaky_softplus(x):
    # Purely elementwise op: flatten to a lane-dense (rows, 128) f32 slab
    # (last dim -> lanes), invert, reshape back to the original shape.
    orig_shape = x.shape
    flat = jnp.ravel(x).astype(jnp.float32)
    n = flat.shape[0]
    pad = (-n) % _LANE
    if pad:  # only pad to a lane multiple; no-op when already 128-aligned
        flat = jnp.pad(flat, (0, pad))
    rows = flat.shape[0] // _LANE
    y2d = flat.reshape(rows, _LANE)

    block_rows = _choose_block_rows(rows)
    grid = (pl.cdiv(rows, block_rows),)

    n_elems = rows * _LANE
    cost = pl.CostEstimate(
        flops=15 * _HALLEY_ITERS * n_elems,
        transcendentals=3 * _HALLEY_ITERS * n_elems,
        bytes_accessed=2 * 4 * n_elems,
    )

    out2d = pl.pallas_call(
        _inv_leaky_softplus_kernel,
        out_shape=jax.ShapeDtypeStruct((rows, _LANE), jnp.float32),
        grid_spec=pltpu.PrefetchScalarGridSpec(
            num_scalar_prefetch=0,
            grid=grid,
            in_specs=[pl.BlockSpec((block_rows, _LANE), lambda i: (i, 0))],
            out_specs=pl.BlockSpec((block_rows, _LANE), lambda i: (i, 0)),
        ),
        compiler_params=pltpu.CompilerParams(
            dimension_semantics=("parallel",)),
        cost_estimate=cost,
    )(y2d)

    out_flat = out2d.reshape(-1)
    if pad:  # only slice when we actually padded
        out_flat = out_flat[:n]
    # Output dtype matches torch.tensor(yfit, dtype=torch.float32).
    return out_flat.reshape(orig_shape)


if __name__ == "__main__":
    key = jax.random.PRNGKey(0)
    # Small NCHW input, e.g. the output of some layer followed by LeakySoftplus.
    x = 3.0 * jax.random.normal(key, (2, 4, 16, 16), dtype=jnp.float32)

    out = inverted_leaky_softplus(x)
    out = jax.block_until_ready(out)

    # Self-check: applying the forward LeakySoftplus to the kernel output must
    # recover the input (this is exactly what the spline-based inverse does,
    # up to interpolation error).
    recon = _leaky_softplus(out)
    err = float(jnp.max(jnp.abs(recon - x)))
    assert out.shape == x.shape and out.dtype == jnp.float32
    assert err < 1e-4, f"inverse check failed, max err {err}"

    print("KERNEL_OK")
</pallas_src>

<mosaic_0001>
module attributes {stable_mosaic.version = 11 : i64} {
  func.func @_inv_leaky_softplus_kernel(%arg0: i32, %arg1: memref<8x128xf32, #tpu.memory_space<vmem>>, %arg2: memref<8x128xf32, #tpu.memory_space<vmem>>) attributes {dimension_semantics = [#tpu.dimension_semantics<parallel>], iteration_bounds = array<i64: 2>, scalar_prefetch = 0 : i64, scratch_operands = 0 : i64, tpu.core_type = #tpu.core_type<tc>, window_params = [{transform_indices = @transform_0, window_bounds = array<i64: 8, 128>}, {transform_indices = @transform_1, window_bounds = array<i64: 8, 128>}]} {
    %c0 = arith.constant 0 : index
    %c0_0 = arith.constant 0 : index
    %0 = vector.load %arg1[%c0, %c0_0] : memref<8x128xf32, #tpu.memory_space<vmem>>, vector<8x128xf32>
    %cst = arith.constant 0.000000e+00 : f32
    %1 = vector.broadcast %cst : f32 to vector<8x128xf32>
    %2 = arith.cmpf ogt, %0, %1 : vector<8x128xf32>
    %cst_1 = arith.constant 1.000000e+01 : f32
    %3 = vector.broadcast %cst_1 : f32 to vector<8x128xf32>
    %4 = arith.mulf %0, %3 : vector<8x128xf32>
    %5 = arith.select %2, %0, %4 : vector<8x128xi1>, vector<8x128xf32>
    %c0_i32 = arith.constant 0 : i32
    %6 = math.absf %5 : vector<8x128xf32>
    %cst_2 = arith.constant 0.000000e+00 : f32
    %7 = vector.broadcast %cst_2 : f32 to vector<8x128xf32>
    %8 = arith.subf %7, %6 : vector<8x128xf32>
    %9 = math.exp %8 : vector<8x128xf32>
    %cst_3 = arith.constant 1.000000e+00 : f32
    %10 = vector.broadcast %cst_3 : f32 to vector<8x128xf32>
    %11 = arith.addf %10, %9 : vector<8x128xf32>
    %12 = math.log %11 : vector<8x128xf32>
    %cst_4 = arith.constant 0.000000e+00 : f32
    %13 = vector.broadcast %cst_4 : f32 to vector<8x128xf32>
    %14 = arith.maximumf %5, %13 : vector<8x128xf32>
    %15 = arith.addf %12, %14 : vector<8x128xf32>
    %cst_5 = arith.constant 1.000000e-01 : f32
    %16 = vector.broadcast %cst_5 : f32 to vector<8x128xf32>
    %17 = arith.mulf %16, %5 : vector<8x128xf32>
    %cst_6 = arith.constant 0.899999976 : f32
    %18 = vector.broadcast %cst_6 : f32 to vector<8x128xf32>
    %19 = arith.mulf %18, %15 : vector<8x128xf32>
    %20 = arith.addf %17, %19 : vector<8x128xf32>
    %21 = arith.subf %20, %0 : vector<8x128xf32>
    %cst_7 = arith.constant 0.000000e+00 : f32
    %22 = vector.broadcast %cst_7 : f32 to vector<8x128xf32>
    %23 = arith.cmpf oge, %5, %22 : vector<8x128xf32>
    %cst_8 = arith.constant 1.000000e+00 : f32
    %24 = vector.broadcast %cst_8 : f32 to vector<8x128xf32>
    %25 = arith.select %23, %24, %9 : vector<8x128xi1>, vector<8x128xf32>
    %cst_9 = arith.constant 1.000000e+00 : f32
    %26 = vector.broadcast %cst_9 : f32 to vector<8x128xf32>
    %27 = arith.addf %26, %9 : vector<8x128xf32>
    %cst_10 = arith.constant 1.000000e-01 : f32
    %28 = vector.broadcast %cst_10 : f32 to vector<8x128xf32>
    %29 = arith.mulf %28, %27 : vector<8x128xf32>
    %cst_11 = arith.constant 0.899999976 : f32
    %30 = vector.broadcast %cst_11 : f32 to vector<8x128xf32>
    %31 = arith.mulf %30, %25 : vector<8x128xf32>
    %32 = arith.addf %29, %31 : vector<8x128xf32>
    %cst_12 = arith.constant 2.000000e+00 : f32
    %33 = vector.broadcast %cst_12 : f32 to vector<8x128xf32>
    %34 = arith.mulf %33, %21 : vector<8x128xf32>
    %35 = arith.mulf %34, %32 : vector<8x128xf32>
    %36 = arith.mulf %35, %27 : vector<8x128xf32>
    %37 = arith.mulf %32, %32 : vector<8x128xf32>
    %cst_13 = arith.constant 2.000000e+00 : f32
    %38 = vector.broadcast %cst_13 : f32 to vector<8x128xf32>
    %39 = arith.mulf %38, %37 : vector<8x128xf32>
    %cst_14 = arith.constant 0.899999976 : f32
    %40 = vector.broadcast %cst_14 : f32 to vector<8x128xf32>
    %41 = arith.mulf %40, %21 : vector<8x128xf32>
    %42 = arith.mulf %41, %9 : vector<8x128xf32>
    %43 = arith.subf %39, %42 : vector<8x128xf32>
    %44 = tpu.reciprocal %43 {approx = true} : vector<8x128xf32> -> vector<8x128xf32>
    %45 = arith.mulf %36, %44 : vector<8x128xf32>
    %46 = arith.subf %5, %45 : vector<8x128xf32>
    %c1_i32 = arith.constant 1 : i32
    %47 = math.absf %46 : vector<8x128xf32>
    %cst_15 = arith.constant 0.000000e+00 : f32
    %48 = vector.broadcast %cst_15 : f32 to vector<8x128xf32>
    %49 = arith.subf %48, %47 : vector<8x128xf32>
    %50 = math.exp %49 : vector<8x128xf32>
    %cst_16 = arith.constant 1.000000e+00 : f32
    %51 = vector.broadcast %cst_16 : f32 to vector<8x128xf32>
    %52 = arith.addf %51, %50 : vector<8x128xf32>
    %53 = math.log %52 : vector<8x128xf32>
    %cst_17 = arith.constant 0.000000e+00 : f32
    %54 = vector.broadcast %cst_17 : f32 to vector<8x128xf32>
    %55 = arith.maximumf %46, %54 : vector<8x128xf32>
    %56 = arith.addf %53, %55 : vector<8x128xf32>
    %cst_18 = arith.constant 1.000000e-01 : f32
    %57 = vector.broadcast %cst_18 : f32 to vector<8x128xf32>
    %58 = arith.mulf %57, %46 : vector<8x128xf32>
    %cst_19 = arith.constant 0.899999976 : f32
    %59 = vector.broadcast %cst_19 : f32 to vector<8x128xf32>
    %60 = arith.mulf %59, %56 : vector<8x128xf32>
    %61 = arith.addf %58, %60 : vector<8x128xf32>
    %62 = arith.subf %61, %0 : vector<8x128xf32>
    %cst_20 = arith.constant 0.000000e+00 : f32
    %63 = vector.broadcast %cst_20 : f32 to vector<8x128xf32>
    %64 = arith.cmpf oge, %46, %63 : vector<8x128xf32>
    %cst_21 = arith.constant 1.000000e+00 : f32
    %65 = vector.broadcast %cst_21 : f32 to vector<8x128xf32>
    %66 = arith.select %64, %65, %50 : vector<8x128xi1>, vector<8x128xf32>
    %cst_22 = arith.constant 1.000000e+00 : f32
    %67 = vector.broadcast %cst_22 : f32 to vector<8x128xf32>
    %68 = arith.addf %67, %50 : vector<8x128xf32>
    %cst_23 = arith.constant 1.000000e-01 : f32
    %69 = vector.broadcast %cst_23 : f32 to vector<8x128xf32>
    %70 = arith.mulf %69, %68 : vector<8x128xf32>
    %cst_24 = arith.constant 0.899999976 : f32
    %71 = vector.broadcast %cst_24 : f32 to vector<8x128xf32>
    %72 = arith.mulf %71, %66 : vector<8x128xf32>
    %73 = arith.addf %70, %72 : vector<8x128xf32>
    %cst_25 = arith.constant 2.000000e+00 : f32
    %74 = vector.broadcast %cst_25 : f32 to vector<8x128xf32>
    %75 = arith.mulf %74, %62 : vector<8x128xf32>
    %76 = arith.mulf %75, %73 : vector<8x128xf32>
    %77 = arith.mulf %76, %68 : vector<8x128xf32>
    %78 = arith.mulf %73, %73 : vector<8x128xf32>
    %cst_26 = arith.constant 2.000000e+00 : f32
    %79 = vector.broadcast %cst_26 : f32 to vector<8x128xf32>
    %80 = arith.mulf %79, %78 : vector<8x128xf32>
    %cst_27 = arith.constant 0.899999976 : f32
    %81 = vector.broadcast %cst_27 : f32 to vector<8x128xf32>
    %82 = arith.mulf %81, %62 : vector<8x128xf32>
    %83 = arith.mulf %82, %50 : vector<8x128xf32>
    %84 = arith.subf %80, %83 : vector<8x128xf32>
    %85 = tpu.reciprocal %84 {approx = true} : vector<8x128xf32> -> vector<8x128xf32>
    %86 = arith.mulf %77, %85 : vector<8x128xf32>
    %87 = arith.subf %46, %86 : vector<8x128xf32>
    %c2_i32 = arith.constant 2 : i32
    %88 = math.absf %87 : vector<8x128xf32>
    %cst_28 = arith.constant 0.000000e+00 : f32
    %89 = vector.broadcast %cst_28 : f32 to vector<8x128xf32>
    %90 = arith.subf %89, %88 : vector<8x128xf32>
    %91 = math.exp %90 : vector<8x128xf32>
    %cst_29 = arith.constant 1.000000e+00 : f32
    %92 = vector.broadcast %cst_29 : f32 to vector<8x128xf32>
    %93 = arith.addf %92, %91 : vector<8x128xf32>
    %94 = math.log %93 : vector<8x128xf32>
    %cst_30 = arith.constant 0.000000e+00 : f32
    %95 = vector.broadcast %cst_30 : f32 to vector<8x128xf32>
    %96 = arith.maximumf %87, %95 : vector<8x128xf32>
    %97 = arith.addf %94, %96 : vector<8x128xf32>
    %cst_31 = arith.constant 1.000000e-01 : f32
    %98 = vector.broadcast %cst_31 : f32 to vector<8x128xf32>
    %99 = arith.mulf %98, %87 : vector<8x128xf32>
    %cst_32 = arith.constant 0.899999976 : f32
    %100 = vector.broadcast %cst_32 : f32 to vector<8x128xf32>
    %101 = arith.mulf %100, %97 : vector<8x128xf32>
    %102 = arith.addf %99, %101 : vector<8x128xf32>
    %103 = arith.subf %102, %0 : vector<8x128xf32>
    %cst_33 = arith.constant 0.000000e+00 : f32
    %104 = vector.broadcast %cst_33 : f32 to vector<8x128xf32>
    %105 = arith.cmpf oge, %87, %104 : vector<8x128xf32>
    %cst_34 = arith.constant 1.000000e+00 : f32
    %106 = vector.broadcast %cst_34 : f32 to vector<8x128xf32>
    %107 = arith.select %105, %106, %91 : vector<8x128xi1>, vector<8x128xf32>
    %cst_35 = arith.constant 1.000000e+00 : f32
    %108 = vector.broadcast %cst_35 : f32 to vector<8x128xf32>
    %109 = arith.addf %108, %91 : vector<8x128xf32>
    %cst_36 = arith.constant 1.000000e-01 : f32
    %110 = vector.broadcast %cst_36 : f32 to vector<8x128xf32>
    %111 = arith.mulf %110, %109 : vector<8x128xf32>
    %cst_37 = arith.constant 0.899999976 : f32
    %112 = vector.broadcast %cst_37 : f32 to vector<8x128xf32>
    %113 = arith.mulf %112, %107 : vector<8x128xf32>
    %114 = arith.addf %111, %113 : vector<8x128xf32>
    %cst_38 = arith.constant 2.000000e+00 : f32
    %115 = vector.broadcast %cst_38 : f32 to vector<8x128xf32>
    %116 = arith.mulf %115, %103 : vector<8x128xf32>
    %117 = arith.mulf %116, %114 : vector<8x128xf32>
    %118 = arith.mulf %117, %109 : vector<8x128xf32>
    %119 = arith.mulf %114, %114 : vector<8x128xf32>
    %cst_39 = arith.constant 2.000000e+00 : f32
    %120 = vector.broadcast %cst_39 : f32 to vector<8x128xf32>
    %121 = arith.mulf %120, %119 : vector<8x128xf32>
    %cst_40 = arith.constant 0.899999976 : f32
    %122 = vector.broadcast %cst_40 : f32 to vector<8x128xf32>
    %123 = arith.mulf %122, %103 : vector<8x128xf32>
    %124 = arith.mulf %123, %91 : vector<8x128xf32>
    %125 = arith.subf %121, %124 : vector<8x128xf32>
    %126 = tpu.reciprocal %125 {approx = true} : vector<8x128xf32> -> vector<8x128xf32>
    %127 = arith.mulf %118, %126 : vector<8x128xf32>
    %128 = arith.subf %87, %127 : vector<8x128xf32>
    %c0_41 = arith.constant 0 : index
    %c0_42 = arith.constant 0 : index
    %129 = vector.load %arg2[%c0_41, %c0_42] : memref<8x128xf32, #tpu.memory_space<vmem>>, vector<8x128xf32>
    tpu.vector_store %arg2[%c0_41, %c0_42], %128 {strides = array<i32>} : memref<8x128xf32, #tpu.memory_space<vmem>>, vector<8x128xf32>,
    return
  }
  func.func @transform_0(%arg0: i32) -> (i32, i32) {
    %c0_i32 = arith.constant 0 : i32
    %c0_i32_0 = arith.constant 0 : i32
    return %arg0, %c0_i32 : i32, i32
  }
  func.func @transform_1(%arg0: i32) -> (i32, i32) {
    %c0_i32 = arith.constant 0 : i32
    %c0_i32_0 = arith.constant 0 : i32
    return %arg0, %c0_i32 : i32, i32
  }
}

</mosaic_0001>

<bundles_post_ra>
// kernel: tpu_custom_call.1
= control target key start
LH: loop header
LB: loop body
LE: loop exit
PB: predicated region body
PF: predicated region fallthrough
CT: control target
= control target key end

     0   :  { %6 = vsyncpa [#allocation3], 0  ;;  %s635_s0 = inlined_call_operand.hbm [shape: f32[16,128], index: 0, kind: input, shape index: {}]   ;;  %s636_s1 = inlined_call_operand.hbm [shape: f32[16,128], index: 1, kind: output, shape index: {}]  }
   0x1   :  { %8 = vsyncpa [#allocation3 + $0x1], 0 }
   0x2   :  { %9 = vsyncpa [#allocation4], 0 }
   0x3   :  { %11 = vsyncpa [#allocation4 + $0x1], 0  ;;  %s496_s6 = smov 0   ;;  %s498_s7 = smov 0  }
   0x4   :  { %s500_s8 = smov 0   ;;  %s502_s9 = smov 0  }
   0x5 LB: > { %s517_s10 = sadd.s32 4294967295, %s484_s9   ;;  %s312_s11 = sadd.s32 4294967294, %s484_s9   ;;  %s484_s9 = sphi %s502_s9, %s646_s9   ;;  %s480_s8 = sphi %s500_s8, %s645_s8   ;;  %s476_s7 = sphi %s498_s7, %s644_s7   ;;  %s472_s6 = sphi %s496_s6, %s643_s6  }
   0x6   : > { %s521_s12 = sadd.s32 1, %s484_s9   ;;  %s24_s13 = sadd.s32 1, %s480_s8 }
   0x7   : > { %s21_s14 = ssub.s32 %s484_s9, %s521_s12  ;;  %p31_p0 = scmp.ne.s32.totalorder %s480_s8, %s476_s7 }
   0x8   : > { %p22_p1 = scmp.eq.s32.totalorder %s21_s14, 0  ;;  %p32_p2 = scmp.eq.s32.totalorder %s484_s9, 0 }
   0x9   : > { %p37_p3 = scmp.ne.s32.totalorder %s476_s7, %s472_s6  ;;  %p38_p4 = scmp.eq.s32.totalorder %s517_s10, 0 }
   0xa   : > { %s533_s15 = scalar_select %p22_p1, %s480_s8, %s24_s13  }
   0xb   : > { %p535_p5 = por %p32_p2, %p31_p0  ;;  %p539_p6 = por %p38_p4, %p37_p3 }
   0xc   : > { %p61_p7 = scmp.eq.s32.totalorder %s517_s10, 1  ;;  %p67_p8 = scmp.eq.s32.totalorder %s312_s11, 1 }
   0xd   : > { %p336_p10 = scmp.lt.s32.totalorder %s484_s9, 2  ;;  %s87_s20 = sand.u32 1, %s480_s8  }
   0xe   : > { %p546_p11 = por %p61_p7, %p31_p0  ;;  %p550_p12 = por %p67_p8, %p37_p3 }
   0xf   : > { %s316_s21 = sshll.u32 %s484_s9, 3  ;;  %s315_s22 = sshll.u32 %s87_s20, 3 }
  0x10   : > { %s95_s25 = scalar_lea.hbm %s635_s0, %s316_s21  ;;  %s91_s27 = scalar_lea.vmem [#allocation2], %s315_s22 }
  0x11   : > { %s97_s26 = sshll.u32 %s95_s25, 4  ;;  %s99_s28 = sshll.u32 %s91_s27, 4  ;;  %s98_s26 = int_to_ptr.hbm [resolvable:$true] %s97_s26  ;;  %s100_s28 = int_to_ptr.vmem [resolvable:$true] %s99_s28 }
  0x12   : > { %p561_p13 = pnand %p336_p10, %p535_p5  ;;  %p317_p0 = scmp.ge.s32.totalorder %s484_s9, 1 }
  0x13   : > { %p104_p1 = scmp.lt.s32.totalorder %s484_s9, 3  ;;  %s88_s30 = scalar_lea.sflag [#allocation3], %s87_s20 }
  0x14   : > { %s388_s2 = sshra.s32 %s98_s26, 4  ;;  %p392_p3 = pneg %p561_p13  ;;  %s389_s2 = int_to_ptr.hbm [resolvable:$true] %s388_s2 }
  0x15   : > { %s390_s3 = scalar_lea.hbm %s389_s2, 8  ;;  %s395_s11 = scalar_lea.hbm %s635_s0, 16 }
  0x16   : > { %p391_p2 = scmp.ne.s32.totalorder %s389_s2, %s390_s3  ;;  %p396_p5 = scmp.lt.s32.totalorder %s389_s2, %s635_s0 }
  0x17   : > { %p397_p8 = scmp.lt.s32.totalorder %s395_s11, %s390_s3 }
  0x18   : > { %p393_p4 = pnand %p392_p3, %p391_p2 }
  0x19   : > { %p398_p10 = por %p397_p8, %p396_p5 }
  0x1a   : > { %p394_p7 = pneg %p393_p4 }
  0x1c   : > { %p399_p9 = pnand %p398_p10, %p394_p7 }
  0x1e   : > { %402 = shalt.err (!%p399_p9)
}
  0x1f   : > { %331 = dma.hbm_to_vmem [thread:$0]  (!%p561_p13), %s98_s26, 128, %s100_s28, %s88_s30  }
  0x20   : > { %p105_p2 = pnand %p317_p0, %p104_p1 }
  0x21   : > { %s582_s16 = sand.u32 (!%p105_p2), 1, %s476_s7  }
  0x22   : > { %108 = sbr.rel (%p105_p2) target bundleno = 194 (0xc2), region = 24  ;;  %s318_s20 = sshll.u32 (!%p105_p2), %s582_s16, 3 }
  0x23   : > { %s111_s21 = scalar_lea.sflag (!%p105_p2), [#allocation3], %s582_s16  ;;  %s114_s22 = scalar_lea.vmem (!%p105_p2), [#allocation2], %s318_s20 }
  0x27   : > { %463 = dma.done.wait (%p539_p6), %s111_s21, 128  }
  0x28   : > { %465 = vsyncadd (%p539_p6), %s111_s21, 4294967168  ;;  %v592_v0 = vld [vmem:[%s114_s22] sm:$0xff]  ;;  %s321_s17 = sshll.u32 %s517_s10, 3  ;;  %s133_s26 = scalar_lea.vmem [#allocation5], %s318_s20 }
  0x29   : > { %vm135_vm0 = vcmp.gt.f32.partialorder %v592_v0, 0.0  ;;  %v136_v1 = vmul.f32 10.0, %v592_v0  ;;  %s237_s25 = scalar_lea.hbm %s636_s1, %s321_s17  ;;  %s239_s27 = sshll.u32 %s133_s26, 4  ;;  %s240_s27 = int_to_ptr.vmem [resolvable:$true] %s239_s27 }
  0x2a   : > { %s241_s28 = sshll.u32 %s237_s25, 4  ;;  %s227_s29 = scalar_lea.sflag [#allocation4], %s582_s16  ;;  %s242_s28 = int_to_ptr.hbm [resolvable:$true] %s241_s28 }
  0x2b   : > { %v137_v2 = vsel %vm135_vm0, %v592_v0, %v136_v1  ;;  %s432_s30 = sshra.s32 %s242_s28, 4  ;;  %s438_s4 = scalar_lea.hbm %s636_s1, 16  ;;  %s433_s30 = int_to_ptr.hbm [resolvable:$true] %s432_s30 }
  0x2c   : > { %v138_v3 = vand.u32 2147483647, %v137_v2  ;;  %vm151_vm1 = vcmp.ge.f32.partialorder %v137_v2, 0.0  ;;  %v145_v9 = vmax.f32 %v137_v2, 0.0  ;;  %v147_v15 = vmul.f32 0.1, %v137_v2  ;;  %p439_p0 = scmp.lt.s32.totalorder %s433_s30, %s636_s1 }
  0x2d   : > { %s434_s10 = scalar_lea.hbm %s433_s30, 8 }
  0x2e   : > { %v139_v4 = vsub.f32 0.0, %v138_v3  ;;  %p435_p6 = scmp.ne.s32.totalorder %s433_s30, %s434_s10  ;;  %p440_p1 = scmp.lt.s32.totalorder %s438_s4, %s434_s10 }
  0x30   : > { %v140_v5 = vmul.f32 1.442695, %v139_v4  ;;  %p436_p9 = pnand %p435_p6, %p546_p11  ;;  %p441_p3 = por %p440_p1, %p439_p0 }
  0x32   : > { %370 = vpow2.f32 %v140_v5  ;;  %p437_p13 = pneg %p436_p9 }
  0x34   : > { %p442_p4 = pnand %p441_p3, %p437_p13 }
  0x38   : > { %v371_v6 = vpop.eup %370 }
  0x39   : > { %v142_v7 = vadd.f32 1.0, %v371_v6  ;;  %v152_v8 = vsel %vm151_vm1, 1.0, %v371_v6 }
  0x3a   : > { %v154_v11 = vmul.f32 0.9, %v152_v8 }
  0x3b   : > { %372 = vlog2.f32 %v142_v7  ;;  %v153_v10 = vmul.f32 0.1, %v142_v7 }
  0x3d   : > { %v155_v16 = vadd.f32 %v154_v11, %v153_v10 }
  0x3f   : > { %v159_v19 = vmul.f32 %v155_v16, %v155_v16 }
  0x41   : > { %v373_v12 = vpop.eup %372  ;;  %v160_v21 = vmul.f32 2.0, %v159_v19 }
  0x42   : > { %v144_v13 = vmul.f32 0.6931472, %v373_v12 }
  0x44   : > { %v146_v14 = vadd.f32 %v145_v9, %v144_v13 }
  0x46   : > { %v148_v17 = vmul.f32 0.9, %v146_v14 }
  0x48   : > { %v149_v18 = vadd.f32 %v148_v17, %v147_v15 }
  0x4a   : > { %v150_v20 = vsub.f32 %v149_v18, %v592_v0 }
  0x4c   : > { %v161_v22 = vmul.f32 0.9, %v150_v20  ;;  %v156_v23 = vmul.f32 2.0, %v150_v20 }
  0x4e   : > { %v162_v24 = vmul.f32 %v371_v6, %v161_v22  ;;  %v157_v26 = vmul.f32 %v156_v23, %v155_v16 }
  0x50   : > { %v163_v25 = vsub.f32 %v160_v21, %v162_v24  ;;  %v158_v27 = vmul.f32 %v157_v26, %v142_v7 }
  0x52   : > { %374 = vrcp.f32 %v163_v25 }
  0x58   : > { %v375_v28 = vpop.eup %374 }
  0x59   : > { %v165_v29 = vmul.f32 %v375_v28, %v158_v27 }
  0x5b   : > { %v166_v30 = vsub.f32 %v137_v2, %v165_v29 }
  0x5d   : > { %v167_v31 = vand.u32 2147483647, %v166_v30  ;;  %vm180_vm2 = vcmp.ge.f32.partialorder %v166_v30, 0.0  ;;  %v174_v37 = vmax.f32 %v166_v30, 0.0  ;;  %v176_v43 = vmul.f32 0.1, %v166_v30 }
  0x5f   : > { %v168_v32 = vsub.f32 0.0, %v167_v31 }
  0x61   : > { %v169_v33 = vmul.f32 1.442695, %v168_v32 }
  0x63   : > { %376 = vpow2.f32 %v169_v33 }
  0x69   : > { %v377_v34 = vpop.eup %376 }
  0x6a   : > { %v171_v35 = vadd.f32 1.0, %v377_v34  ;;  %v181_v36 = vsel %vm180_vm2, 1.0, %v377_v34 }
  0x6b   : > { %v183_v39 = vmul.f32 0.9, %v181_v36 }
  0x6c   : > { %378 = vlog2.f32 %v171_v35  ;;  %v182_v38 = vmul.f32 0.1, %v171_v35 }
  0x6e   : > { %v184_v44 = vadd.f32 %v183_v39, %v182_v38 }
  0x70   : > { %v188_v47 = vmul.f32 %v184_v44, %v184_v44 }
  0x72   : > { %v379_v40 = vpop.eup %378  ;;  %v189_v50 = vmul.f32 2.0, %v188_v47 }
  0x73   : > { %v173_v41 = vmul.f32 0.6931472, %v379_v40 }
  0x75   : > { %v175_v42 = vadd.f32 %v174_v37, %v173_v41 }
  0x77   : > { %v177_v45 = vmul.f32 0.9, %v175_v42 }
  0x79   : > { %v178_v46 = vadd.f32 %v177_v45, %v176_v43 }
  0x7b   : > { %v179_v48 = vsub.f32 %v178_v46, %v592_v0 }
  0x7d   : > { %v190_v49 = vmul.f32 0.9, %v179_v48  ;;  %v185_v51 = vmul.f32 2.0, %v179_v48 }
  0x7f   : > { %v191_v52 = vmul.f32 %v377_v34, %v190_v49  ;;  %v186_v54 = vmul.f32 %v185_v51, %v184_v44 }
  0x81   : > { %v192_v53 = vsub.f32 %v189_v50, %v191_v52  ;;  %v187_v55 = vmul.f32 %v186_v54, %v171_v35 }
  0x83   : > { %380 = vrcp.f32 %v192_v53 }
  0x89   : > { %v381_v56 = vpop.eup %380 }
  0x8a   : > { %v194_v57 = vmul.f32 %v381_v56, %v187_v55 }
  0x8c   : > { %v195_v58 = vsub.f32 %v166_v30, %v194_v57 }
  0x8e   : > { %v196_v59 = vand.u32 2147483647, %v195_v58  ;;  %vm209_vm3 = vcmp.ge.f32.partialorder %v195_v58, 0.0  ;;  %v203_v2 = vmax.f32 %v195_v58, 0.0  ;;  %v205_v8 = vmul.f32 0.1, %v195_v58 }
  0x90   : > { %v197_v60 = vsub.f32 0.0, %v196_v59 }
  0x92   : > { %v198_v61 = vmul.f32 1.442695, %v197_v60 }
  0x94   : > { %382 = vpow2.f32 %v198_v61 }
  0x9a   : > { %v383_v62 = vpop.eup %382 }
  0x9b   : > { %v200_v63 = vadd.f32 1.0, %v383_v62  ;;  %v210_v1 = vsel %vm209_vm3, 1.0, %v383_v62 }
  0x9c   : > { %v212_v4 = vmul.f32 0.9, %v210_v1 }
  0x9d   : > { %384 = vlog2.f32 %v200_v63  ;;  %v211_v3 = vmul.f32 0.1, %v200_v63 }
  0x9f   : > { %v213_v9 = vadd.f32 %v212_v4, %v211_v3 }
  0xa1   : > { %v217_v12 = vmul.f32 %v213_v9, %v213_v9 }
  0xa3   : > { %v385_v5 = vpop.eup %384  ;;  %v218_v14 = vmul.f32 2.0, %v217_v12 }
  0xa4   : > { %v202_v6 = vmul.f32 0.6931472, %v385_v5 }
  0xa6   : > { %v204_v7 = vadd.f32 %v203_v2, %v202_v6 }
  0xa8   : > { %v206_v10 = vmul.f32 0.9, %v204_v7 }
  0xaa   : > { %v207_v11 = vadd.f32 %v206_v10, %v205_v8 }
  0xac   : > { %v208_v13 = vsub.f32 %v207_v11, %v592_v0 }
  0xae   : > { %v219_v15 = vmul.f32 0.9, %v208_v13  ;;  %v214_v16 = vmul.f32 2.0, %v208_v13 }
  0xb0   : > { %v220_v17 = vmul.f32 %v383_v62, %v219_v15  ;;  %v215_v19 = vmul.f32 %v214_v16, %v213_v9 }
  0xb2   : > { %v221_v18 = vsub.f32 %v218_v14, %v220_v17  ;;  %v216_v20 = vmul.f32 %v215_v19, %v200_v63 }
  0xb4   : > { %386 = vrcp.f32 %v221_v18 }
  0xba   : > { %v387_v21 = vpop.eup %386 }
  0xbb   : > { %v223_v0 = vmul.f32 %v387_v21, %v216_v20 }
  0xbd   : > { %v224_v22 = vsub.f32 %v195_v58, %v223_v0 }
  0xbf   : > { %225 = vst [vmem:[%s133_s26] sm:$0xff] %v224_v22 }
  0xc0   : > { %445 = shalt.err (!%p442_p4)
}
  0xc1   : > { %326 = dma.vmem_to_hbm [thread:$0]  (%p546_p11), %s240_s27, 128, %s242_s28, %s227_s29  }
  0xc2 PF: > { %s253_s13 = sand.u32 1, %s472_s6   ;;  %p642_p7 = scmp.ge.s32.totalorder %s484_s9, 2 }
  0xc3   : > { %s254_s14 = scalar_lea.sflag [#allocation4], %s253_s13 }
  0xc4   : > { %p333_p5 = pnand %p642_p7, %p550_p12 }
  0xc6   : > { %p334_p8 = pneg %p333_p5 }
  0xc8   : > { %467 = dma.done.wait (%p334_p8), %s254_s14, 128  }
  0xc9   : > { %469 = vsyncadd (%p334_p8), %s254_s14, 4294967168  ;;  %p14_p10 = scmp.ge.s32.totalorder %s521_s12, 4   ;;  %s643_s6 = smov %s476_s7 }
  0xca   : > { %s644_s7 = smov %s480_s8  ;;  %s645_s8 = smov %s533_s15 }
  0xcb   : > { %s646_s9 = smov %s521_s12  ;;  %16 = sbr.rel (!%p14_p10) target bundleno = 5 (0x5), region = 69 }
  0xd0   :  { %260 = vsyncpa [#allocation3], 1 }
  0xd1   :  { %262 = vsyncpa [#allocation3 + $0x1], 1 }
  0xd2   :  { %263 = vsyncpa [#allocation4], 1 }
  0xd3   :  { %265 = vsyncpa [#allocation4 + $0x1], 1 }

</bundles_post_ra>
